<compile_context>
chip_gen: v6e
topology: v6e:2x2x1
jax: 0.10.0
libtpu: 0.0.40
codegen_flags: <defaults>
</compile_context>

<pallas_src>
import functools

import jax
import jax.numpy as jnp
from jax import lax
from jax.experimental import pallas as pl
from jax.experimental.pallas import tpu as pltpu


# ---------------------------------------------------------------------------
# Kernel
# ---------------------------------------------------------------------------
def _down_kernel(x_ref, gpool_ref, mshift_ref, w1_ref, b1_ref, w2_ref, b2_ref,
                 o_ref, *, s_pool, batch_block):
    """Fused maxpool(2) + (3x3 conv + folded BN + ReLU) x 2.

    x_ref     : (B, C_in, S_full)      full-res NCHW image(s), spatial flattened
    gpool_ref : (S_full, 4*S_pool)     bf16 0/1 pool-window selection matrix
    mshift_ref: (S_pool, 9*S_pool)     bf16 0/1 3x3-tap shift matrix (pad=1 baked in)
    w1_ref    : (C_mid, 9*C_in)        bf16 conv1 im2col weights (BN1 folded)
    b1_ref    : (C_mid, 1)             f32 conv1 bias (BN1 folded)
    w2_ref    : (C_out, 9*C_mid)       bf16 conv2 im2col weights (BN2 folded)
    b2_ref    : (C_out, 1)             f32 conv2 bias (BN2 folded)
    o_ref     : (B, C_out, S_pool)
    """
    f32 = jnp.float32
    bf16 = jnp.bfloat16

    gpool = gpool_ref[...]            # resident, bf16
    mshift = mshift_ref[...]          # resident, bf16
    w1 = w1_ref[...]
    w2 = w2_ref[...]
    b1 = b1_ref[...]
    b2 = b2_ref[...]

    def conv3x3(act_bf16, w_mat, b_col):
        # One shift matmul produces all 9 (masked) tap copies at once ...
        r = jnp.dot(act_bf16, mshift, preferred_element_type=f32)   # (C, 9*S)
        taps = [r[:, t * s_pool:(t + 1) * s_pool] for t in range(9)]
        # ... which are stacked tap-major into the im2col patch matrix, and
        # the conv is ONE matmul with K = 9*C (instead of nine K=C matmuls).
        patches = jnp.concatenate(taps, axis=0).astype(bf16)        # (9*C, S)
        acc = jnp.dot(w_mat, patches, preferred_element_type=f32)   # (C', S)
        return jnp.maximum(acc + b_col, 0.0)                        # f32

    # Static unroll over the images packed into this grid step.
    for b in range(batch_block):
        x = x_ref[b].astype(bf16)                                   # (C_in, S_full)

        # --- fused 2x2/stride-2 max-pool --------------------------------
        # cand[:, j*S_pool + p] = x[:, anchor(p) + off_j]; max over the 4
        # window offsets gives the pooled image (bf16 rounding is monotone,
        # so max-then-round == round-then-max).
        cand = jnp.dot(x, gpool, preferred_element_type=f32)        # (C_in, 4*S)
        pooled = jnp.maximum(
            jnp.maximum(cand[:, 0:s_pool], cand[:, s_pool:2 * s_pool]),
            jnp.maximum(cand[:, 2 * s_pool:3 * s_pool],
                        cand[:, 3 * s_pool:4 * s_pool]))

        # --- conv1 + (folded) BN1 + ReLU, conv2 + BN2 + ReLU -------------
        h1 = conv3x3(pooled.astype(bf16), w1, b1)                   # (C_mid, S)
        h2 = conv3x3(h1.astype(bf16), w2, b2)                       # (C_out, S)

        # NOTE: s_pool < 128 at the demo size -> masked partial stores; at
        # production Down sizes (hp*wp >= 1024) the store is lane-dense.
        o_ref[b] = h2.astype(o_ref.dtype)


# ---------------------------------------------------------------------------
# Constant matrices (built once in the wrapper; tiny at these shapes)
# ---------------------------------------------------------------------------
def _pool_select_matrix(hp, wp, we, dtype):
    """(S_full, 4*S_pool) 0/1 matrix selecting the 4 elems of each 2x2 window."""
    s_pool = hp * wp
    s_full = (2 * hp) * we
    hh = jnp.arange(hp)
    ww = jnp.arange(wp)
    anchors = (2 * hh[:, None] * we + 2 * ww[None, :]).reshape(-1)  # (S_pool,)
    cols = jnp.arange(s_pool)
    g = jnp.zeros((s_full, 4 * s_pool), dtype=jnp.float32)
    for j, off in enumerate((0, 1, we, we + 1)):
        g = g.at[anchors + off, j * s_pool + cols].set(1.0)
    return g.astype(dtype)


def _tap_shift_matrix(hp, wp, dtype):
    """(S_pool, 9*S_pool) 0/1 matrix: column t*S_pool+p holds the (dh,dw)-shifted
    source index of output pixel p, zeroed where the 3x3/pad=1 tap is out of
    bounds (exact padding=1 semantics)."""
    s_pool = hp * wp
    h_flat = jnp.broadcast_to(jnp.arange(hp)[:, None], (hp, wp)).reshape(-1)
    w_flat = jnp.broadcast_to(jnp.arange(wp)[None, :], (hp, wp)).reshape(-1)
    cols = jnp.arange(s_pool)
    m = jnp.zeros((s_pool, 9 * s_pool), dtype=jnp.float32)
    t = 0
    for dh in (-1, 0, 1):
        for dw in (-1, 0, 1):
            hs = h_flat + dh
            ws = w_flat + dw
            valid = (hs >= 0) & (hs < hp) & (ws >= 0) & (ws < wp)
            rows = jnp.clip(hs * wp + ws, 0, s_pool - 1)
            m = m.at[rows, t * s_pool + cols].add(
                jnp.where(valid, 1.0, 0.0))
            t += 1
    return m.astype(dtype)


def _fold_bn_to_matrix(weight, bias, gamma, beta, mean, var, eps):
    """Fold eval-mode BN into the conv and lay weights out for tap-major im2col."""
    scale = gamma / jnp.sqrt(var + eps)                  # (C_out,)
    w_f = weight * scale[:, None, None, None]            # (C_out, C_in, 3, 3)
    b_f = (bias - mean) * scale + beta                   # (C_out,)
    c_out, c_in = weight.shape[0], weight.shape[1]
    # W[co, (kh*3+kw)*C_in + ci] matches patch rows P[t*C_in + ci, p].
    w_mat = jnp.transpose(w_f, (0, 2, 3, 1)).reshape(c_out, 9 * c_in)
    return w_mat.astype(jnp.bfloat16), b_f.reshape(c_out, 1).astype(jnp.float32)


# ---------------------------------------------------------------------------
# Wrapper
# ---------------------------------------------------------------------------
def down_forward(x, params, *, eps=1e-5, images_per_step=1):
    """Down.forward: MaxPool2d(2) -> DoubleConv.  NCHW in, NCHW out."""
    N, C_in, H, W = x.shape
    hp, wp = H // 2, W // 2
    he, we = 2 * hp, 2 * wp
    s_full = he * we
    s_pool = hp * wp

    # MaxPool2d floors odd sizes; for even H,W this slice is a no-op.
    xe = x[:, :, :he, :we]
    x_flat = xe.reshape(N, C_in, s_full)                 # metadata-only reshape

    w1m, b1c = _fold_bn_to_matrix(params["w1"], params["b1"], params["g1"],
                                  params["beta1"], params["m1"], params["v1"], eps)
    w2m, b2c = _fold_bn_to_matrix(params["w2"], params["b2"], params["g2"],
                                  params["beta2"], params["m2"], params["v2"], eps)
    C_mid, C_out = w1m.shape[0], w2m.shape[0]

    gpool = _pool_select_matrix(hp, wp, we, jnp.bfloat16)   # (s_full, 4*s_pool)
    mshift = _tap_shift_matrix(hp, wp, jnp.bfloat16)        # (s_pool, 9*s_pool)

    # Images per grid step: keep >=2 grid steps when possible so v7x's two
    # TensorCores both get work; larger batches can raise this to amortize
    # the fixed per-step overhead.
    B = images_per_step if (images_per_step > 0 and N % images_per_step == 0) else 1
    grid = (N // B,)

    # Advisory cost + explicit VMEM budget (double-buffered blocks + resident
    # constants + headroom), capped well under v7x's 64 MiB physical VMEM.
    flops = 2 * N * (C_in * s_full * 4 * s_pool          # pool selection
                     + C_in * s_pool * 9 * s_pool        # conv1 tap shift
                     + C_mid * 9 * C_in * s_pool         # conv1
                     + C_mid * s_pool * 9 * s_pool       # conv2 tap shift
                     + C_out * 9 * C_mid * s_pool)       # conv2
    const_bytes = int((gpool.size + mshift.size + w1m.size + w2m.size) * 2
                      + (C_mid + C_out) * 4)
    bytes_accessed = int(x_flat.size * x_flat.dtype.itemsize
                         + N * C_out * s_pool * x.dtype.itemsize
                         + const_bytes)
    block_bytes = (B * C_in * s_full + B * C_out * s_pool) * x.dtype.itemsize
    vmem_limit = int(min(48 << 20,
                         max(8 << 20, 4 * block_bytes + 2 * const_bytes + (2 << 20))))

    kernel = functools.partial(_down_kernel, s_pool=s_pool, batch_block=B)

    y_flat = pl.pallas_call(
        kernel,
        out_shape=jax.ShapeDtypeStruct((N, C_out, s_pool), x.dtype),
        grid_spec=pltpu.PrefetchScalarGridSpec(
            num_scalar_prefetch=0,
            grid=grid,
            in_specs=[
                pl.BlockSpec((B, C_in, s_full), lambda n: (n, 0, 0)),
                pl.BlockSpec((s_full, 4 * s_pool), lambda n: (0, 0)),
                pl.BlockSpec((s_pool, 9 * s_pool), lambda n: (0, 0)),
                pl.BlockSpec((C_mid, 9 * C_in), lambda n: (0, 0)),
                pl.BlockSpec((C_mid, 1), lambda n: (0, 0)),
                pl.BlockSpec((C_out, 9 * C_mid), lambda n: (0, 0)),
                pl.BlockSpec((C_out, 1), lambda n: (0, 0)),
            ],
            out_specs=pl.BlockSpec((B, C_out, s_pool), lambda n: (n, 0, 0)),
        ),
        compiler_params=pltpu.CompilerParams(
            dimension_semantics=("parallel",),
            vmem_limit_bytes=vmem_limit),
        cost_estimate=pl.CostEstimate(
            flops=flops, transcendentals=0, bytes_accessed=bytes_accessed),
    )(x_flat, gpool, mshift, w1m, b1c, w2m, b2c)

    return y_flat.reshape(N, C_out, hp, wp)              # metadata-only reshape


# ---------------------------------------------------------------------------
# Plain-JAX reference (f32 everywhere)
# ---------------------------------------------------------------------------
def _reference_down(x, params, eps=1e-5):
    """maxpool(2) -> (conv -> BN(eval) -> ReLU) x 2, all float32."""
    pooled = lax.reduce_window(x, -jnp.inf, lax.max,
                               (1, 1, 2, 2), (1, 1, 2, 2), "VALID")

    def conv_bn_relu(h, w, b, g, beta, m, v):
        y = lax.conv_general_dilated(
            h, w, window_strides=(1, 1), padding=((1, 1), (1, 1)),
            dimension_numbers=("NCHW", "OIHW", "NCHW"))
        y = y + b.reshape(1, -1, 1, 1)
        y = (y - m.reshape(1, -1, 1, 1)) / jnp.sqrt(v.reshape(1, -1, 1, 1) + eps)
        y = y * g.reshape(1, -1, 1, 1) + beta.reshape(1, -1, 1, 1)
        return jnp.maximum(y, 0.0)

    h = conv_bn_relu(pooled, params["w1"], params["b1"], params["g1"],
                     params["beta1"], params["m1"], params["v1"])
    h = conv_bn_relu(h, params["w2"], params["b2"], params["g2"],
                     params["beta2"], params["m2"], params["v2"])
    return h


if __name__ == "__main__":
    key = jax.random.PRNGKey(0)
    keys = jax.random.split(key, 13)

    # Down(in_channels=4, out_channels=8) on a (2, 4, 16, 16) input.
    N, C_in, C_out, H, W = 2, 4, 8, 16, 16

    x = jax.random.normal(keys[0], (N, C_in, H, W), dtype=jnp.float32)

    def conv_params(kw, kb, c_out, c_in):
        bound = 1.0 / ((c_in * 9) ** 0.5)
        w = jax.random.uniform(kw, (c_out, c_in, 3, 3),
                               minval=-bound, maxval=bound, dtype=jnp.float32)
        b = jax.random.uniform(kb, (c_out,),
                               minval=-bound, maxval=bound, dtype=jnp.float32)
        return w, b

    def bn_params(kg, kb, km, kv, c):
        g = jax.random.uniform(kg, (c,), minval=0.5, maxval=1.5,
                               dtype=jnp.float32)
        beta = 0.1 * jax.random.normal(kb, (c,), dtype=jnp.float32)
        m = 0.1 * jax.random.normal(km, (c,), dtype=jnp.float32)
        v = jax.random.uniform(kv, (c,), minval=0.5, maxval=1.5,
                               dtype=jnp.float32)
        return g, beta, m, v

    w1, b1 = conv_params(keys[1], keys[2], C_out, C_in)
    w2, b2 = conv_params(keys[3], keys[4], C_out, C_out)
    g1, beta1, m1, v1 = bn_params(keys[5], keys[6], keys[7], keys[8], C_out)
    g2, beta2, m2, v2 = bn_params(keys[9], keys[10], keys[11], keys[12], C_out)

    params = dict(w1=w1, b1=b1, g1=g1, beta1=beta1, m1=m1, v1=v1,
                  w2=w2, b2=b2, g2=g2, beta2=beta2, m2=m2, v2=v2)

    y = down_forward(x, params)
    jax.block_until_ready(y)

    y_ref = _reference_down(x, params)
    assert y.shape == (N, C_out, H // 2, W // 2), y.shape
    # bf16 MXU inputs through two chained 3x3 convs (f32 accumulation) vs the
    # f32 reference => tolerance ~K * 2^-8.
    assert jnp.allclose(y, y_ref, atol=5e-2, rtol=5e-2), \
        float(jnp.max(jnp.abs(y - y_ref)))

    print("KERNEL_OK")
</pallas_src>

<mosaic_0001>
module attributes {stable_mosaic.version = 11 : i64} {
  func.func @_down_kernel(%arg0: i32, %arg1: memref<1x4x256xf32, #tpu.memory_space<vmem>>, %arg2: memref<256x256xbf16, #tpu.memory_space<vmem>>, %arg3: memref<64x576xbf16, #tpu.memory_space<vmem>>, %arg4: memref<8x36xbf16, #tpu.memory_space<vmem>>, %arg5: memref<8x1xf32, #tpu.memory_space<vmem>>, %arg6: memref<8x72xbf16, #tpu.memory_space<vmem>>, %arg7: memref<8x1xf32, #tpu.memory_space<vmem>>, %arg8: memref<1x8x64xf32, #tpu.memory_space<vmem>>) attributes {dimension_semantics = [#tpu.dimension_semantics<parallel>], iteration_bounds = array<i64: 2>, scalar_prefetch = 0 : i64, scratch_operands = 0 : i64, tpu.core_type = #tpu.core_type<tc>, window_params = [{transform_indices = @transform_0, window_bounds = array<i64: 1, 4, 256>}, {pipeline_mode = #tpu.pipeline_mode<synchronous>, transform_indices = @transform_1, window_bounds = array<i64: 256, 256>}, {pipeline_mode = #tpu.pipeline_mode<synchronous>, transform_indices = @transform_2, window_bounds = array<i64: 64, 576>}, {pipeline_mode = #tpu.pipeline_mode<synchronous>, transform_indices = @transform_3, window_bounds = array<i64: 8, 36>}, {pipeline_mode = #tpu.pipeline_mode<synchronous>, transform_indices = @transform_4, window_bounds = array<i64: 8, 1>}, {pipeline_mode = #tpu.pipeline_mode<synchronous>, transform_indices = @transform_5, window_bounds = array<i64: 8, 72>}, {pipeline_mode = #tpu.pipeline_mode<synchronous>, transform_indices = @transform_6, window_bounds = array<i64: 8, 1>}, {transform_indices = @transform_7, window_bounds = array<i64: 1, 8, 64>}]} {
    %c0 = arith.constant 0 : index
    %c0_0 = arith.constant 0 : index
    %0 = vector.load %arg2[%c0, %c0_0] : memref<256x256xbf16, #tpu.memory_space<vmem>>, vector<256x256xbf16>
    %c0_1 = arith.constant 0 : index
    %c0_2 = arith.constant 0 : index
    %1 = vector.load %arg3[%c0_1, %c0_2] : memref<64x576xbf16, #tpu.memory_space<vmem>>, vector<64x576xbf16>
    %c0_3 = arith.constant 0 : index
    %c0_4 = arith.constant 0 : index
    %2 = vector.load %arg4[%c0_3, %c0_4] : memref<8x36xbf16, #tpu.memory_space<vmem>>, vector<8x36xbf16>
    %c0_5 = arith.constant 0 : index
    %c0_6 = arith.constant 0 : index
    %3 = vector.load %arg6[%c0_5, %c0_6] : memref<8x72xbf16, #tpu.memory_space<vmem>>, vector<8x72xbf16>
    %c0_7 = arith.constant 0 : index
    %c0_8 = arith.constant 0 : index
    %4 = vector.load %arg5[%c0_7, %c0_8] : memref<8x1xf32, #tpu.memory_space<vmem>>, vector<8x1xf32>
    %c0_9 = arith.constant 0 : index
    %c0_10 = arith.constant 0 : index
    %5 = vector.load %arg7[%c0_9, %c0_10] : memref<8x1xf32, #tpu.memory_space<vmem>>, vector<8x1xf32>
    %c0_11 = arith.constant 0 : index
    %c0_12 = arith.constant 0 : index
    %c0_13 = arith.constant 0 : index
    %6 = vector.load %arg1[%c0_11, %c0_12, %c0_13] : memref<1x4x256xf32, #tpu.memory_space<vmem>>, vector<1x4x256xf32>
    %7 = vector.shape_cast %6 : vector<1x4x256xf32> to vector<4x256xf32>
    %8 = arith.truncf %7 : vector<4x256xf32> to vector<4x256xbf16>
    %cst = arith.constant dense<0.000000e+00> : vector<4x256xf32>
    %9 = tpu.matmul %8, %0, %cst {dimension_numbers = #tpu.dot_dimension_numbers<[1], [0], [0], [1], [0, 0, 1, 1], [], []>} : vector<4x256xbf16>, vector<256x256xbf16>, vector<4x256xf32> -> vector<4x256xf32>
    %10 = vector.extract_strided_slice %9 {offsets = [0, 0], sizes = [4, 64], strides = [1, 1]} : vector<4x256xf32> to vector<4x64xf32>
    %11 = vector.extract_strided_slice %9 {offsets = [0, 64], sizes = [4, 64], strides = [1, 1]} : vector<4x256xf32> to vector<4x64xf32>
    %12 = arith.maximumf %10, %11 : vector<4x64xf32>
    %13 = vector.extract_strided_slice %9 {offsets = [0, 128], sizes = [4, 64], strides = [1, 1]} : vector<4x256xf32> to vector<4x64xf32>
    %14 = vector.extract_strided_slice %9 {offsets = [0, 192], sizes = [4, 64], strides = [1, 1]} : vector<4x256xf32> to vector<4x64xf32>
    %15 = arith.maximumf %13, %14 : vector<4x64xf32>
    %16 = arith.maximumf %12, %15 : vector<4x64xf32>
    %17 = arith.truncf %16 : vector<4x64xf32> to vector<4x64xbf16>
    %cst_14 = arith.constant dense<0.000000e+00> : vector<4x576xf32>
    %18 = tpu.matmul %17, %1, %cst_14 {dimension_numbers = #tpu.dot_dimension_numbers<[1], [0], [0], [1], [0, 0, 1, 1], [], []>} : vector<4x64xbf16>, vector<64x576xbf16>, vector<4x576xf32> -> vector<4x576xf32>
    %19 = vector.extract_strided_slice %18 {offsets = [0, 0], sizes = [4, 64], strides = [1, 1]} : vector<4x576xf32> to vector<4x64xf32>
    %20 = vector.extract_strided_slice %18 {offsets = [0, 64], sizes = [4, 64], strides = [1, 1]} : vector<4x576xf32> to vector<4x64xf32>
    %21 = vector.extract_strided_slice %18 {offsets = [0, 128], sizes = [4, 64], strides = [1, 1]} : vector<4x576xf32> to vector<4x64xf32>
    %22 = vector.extract_strided_slice %18 {offsets = [0, 192], sizes = [4, 64], strides = [1, 1]} : vector<4x576xf32> to vector<4x64xf32>
    %23 = vector.extract_strided_slice %18 {offsets = [0, 256], sizes = [4, 64], strides = [1, 1]} : vector<4x576xf32> to vector<4x64xf32>
    %24 = vector.extract_strided_slice %18 {offsets = [0, 320], sizes = [4, 64], strides = [1, 1]} : vector<4x576xf32> to vector<4x64xf32>
    %25 = vector.extract_strided_slice %18 {offsets = [0, 384], sizes = [4, 64], strides = [1, 1]} : vector<4x576xf32> to vector<4x64xf32>
    %26 = vector.extract_strided_slice %18 {offsets = [0, 448], sizes = [4, 64], strides = [1, 1]} : vector<4x576xf32> to vector<4x64xf32>
    %27 = vector.extract_strided_slice %18 {offsets = [0, 512], sizes = [4, 64], strides = [1, 1]} : vector<4x576xf32> to vector<4x64xf32>
    %28 = tpu.concatenate %19, %20, %21, %22, %23, %24, %25, %26, %27 in 0 : vector<4x64xf32>, vector<4x64xf32>, vector<4x64xf32>, vector<4x64xf32>, vector<4x64xf32>, vector<4x64xf32>, vector<4x64xf32>, vector<4x64xf32>, vector<4x64xf32> -> vector<36x64xf32>
    %29 = arith.truncf %28 : vector<36x64xf32> to vector<36x64xbf16>
    %cst_15 = arith.constant dense<0.000000e+00> : vector<8x64xf32>
    %30 = tpu.matmul %2, %29, %cst_15 {dimension_numbers = #tpu.dot_dimension_numbers<[1], [0], [0], [1], [0, 0, 1, 1], [], []>} : vector<8x36xbf16>, vector<36x64xbf16>, vector<8x64xf32> -> vector<8x64xf32>
    %31 = vector.broadcast %4 : vector<8x1xf32> to vector<8x64xf32>
    %32 = arith.addf %30, %31 : vector<8x64xf32>
    %cst_16 = arith.constant 0.000000e+00 : f32
    %33 = vector.broadcast %cst_16 : f32 to vector<8x64xf32>
    %34 = arith.maximumf %32, %33 : vector<8x64xf32>
    %35 = arith.truncf %34 : vector<8x64xf32> to vector<8x64xbf16>
    %cst_17 = arith.constant dense<0.000000e+00> : vector<8x576xf32>
    %36 = tpu.matmul %35, %1, %cst_17 {dimension_numbers = #tpu.dot_dimension_numbers<[1], [0], [0], [1], [0, 0, 1, 1], [], []>} : vector<8x64xbf16>, vector<64x576xbf16>, vector<8x576xf32> -> vector<8x576xf32>
    %37 = vector.extract_strided_slice %36 {offsets = [0, 0], sizes = [8, 64], strides = [1, 1]} : vector<8x576xf32> to vector<8x64xf32>
    %38 = vector.extract_strided_slice %36 {offsets = [0, 64], sizes = [8, 64], strides = [1, 1]} : vector<8x576xf32> to vector<8x64xf32>
    %39 = vector.extract_strided_slice %36 {offsets = [0, 128], sizes = [8, 64], strides = [1, 1]} : vector<8x576xf32> to vector<8x64xf32>
    %40 = vector.extract_strided_slice %36 {offsets = [0, 192], sizes = [8, 64], strides = [1, 1]} : vector<8x576xf32> to vector<8x64xf32>
    %41 = vector.extract_strided_slice %36 {offsets = [0, 256], sizes = [8, 64], strides = [1, 1]} : vector<8x576xf32> to vector<8x64xf32>
    %42 = vector.extract_strided_slice %36 {offsets = [0, 320], sizes = [8, 64], strides = [1, 1]} : vector<8x576xf32> to vector<8x64xf32>
    %43 = vector.extract_strided_slice %36 {offsets = [0, 384], sizes = [8, 64], strides = [1, 1]} : vector<8x576xf32> to vector<8x64xf32>
    %44 = vector.extract_strided_slice %36 {offsets = [0, 448], sizes = [8, 64], strides = [1, 1]} : vector<8x576xf32> to vector<8x64xf32>
    %45 = vector.extract_strided_slice %36 {offsets = [0, 512], sizes = [8, 64], strides = [1, 1]} : vector<8x576xf32> to vector<8x64xf32>
    %46 = tpu.concatenate %37, %38, %39, %40, %41, %42, %43, %44, %45 in 0 : vector<8x64xf32>, vector<8x64xf32>, vector<8x64xf32>, vector<8x64xf32>, vector<8x64xf32>, vector<8x64xf32>, vector<8x64xf32>, vector<8x64xf32>, vector<8x64xf32> -> vector<72x64xf32>
    %47 = arith.truncf %46 : vector<72x64xf32> to vector<72x64xbf16>
    %cst_18 = arith.constant dense<0.000000e+00> : vector<8x64xf32>
    %48 = tpu.matmul %3, %47, %cst_18 {dimension_numbers = #tpu.dot_dimension_numbers<[1], [0], [0], [1], [0, 0, 1, 1], [], []>} : vector<8x72xbf16>, vector<72x64xbf16>, vector<8x64xf32> -> vector<8x64xf32>
    %49 = vector.broadcast %5 : vector<8x1xf32> to vector<8x64xf32>
    %50 = arith.addf %48, %49 : vector<8x64xf32>
    %cst_19 = arith.constant 0.000000e+00 : f32
    %51 = vector.broadcast %cst_19 : f32 to vector<8x64xf32>
    %52 = arith.maximumf %50, %51 : vector<8x64xf32>
    %c0_20 = arith.constant 0 : index
    %c0_21 = arith.constant 0 : index
    %c0_22 = arith.constant 0 : index
    %53 = vector.load %arg8[%c0_20, %c0_21, %c0_22] : memref<1x8x64xf32, #tpu.memory_space<vmem>>, vector<1x8x64xf32>
    %54 = vector.shape_cast %53 : vector<1x8x64xf32> to vector<8x64xf32>
    %55 = vector.shape_cast %52 : vector<8x64xf32> to vector<1x8x64xf32>
    tpu.vector_store %arg8[%c0_20, %c0_21, %c0_22], %55 {strides = array<i32>} : memref<1x8x64xf32, #tpu.memory_space<vmem>>, vector<1x8x64xf32>,
    return
  }
  func.func @transform_0(%arg0: i32) -> (i32, i32, i32) {
    %c0_i32 = arith.constant 0 : i32
    %c0_i32_0 = arith.constant 0 : i32
    %c0_i32_1 = arith.constant 0 : i32
    return %arg0, %c0_i32, %c0_i32_0 : i32, i32, i32
  }
  func.func @transform_1(%arg0: i32) -> (i32, i32) {
    %c0_i32 = arith.constant 0 : i32
    %c0_i32_0 = arith.constant 0 : i32
    %c0_i32_1 = arith.constant 0 : i32
    return %c0_i32, %c0_i32_0 : i32, i32
  }
  func.func @transform_2(%arg0: i32) -> (i32, i32) {
    %c0_i32 = arith.constant 0 : i32
    %c0_i32_0 = arith.constant 0 : i32
    %c0_i32_1 = arith.constant 0 : i32
    return %c0_i32, %c0_i32_0 : i32, i32
  }
  func.func @transform_3(%arg0: i32) -> (i32, i32) {
    %c0_i32 = arith.constant 0 : i32
    %c0_i32_0 = arith.constant 0 : i32
    %c0_i32_1 = arith.constant 0 : i32
    return %c0_i32, %c0_i32_0 : i32, i32
  }
  func.func @transform_4(%arg0: i32) -> (i32, i32) {
    %c0_i32 = arith.constant 0 : i32
    %c0_i32_0 = arith.constant 0 : i32
    %c0_i32_1 = arith.constant 0 : i32
    return %c0_i32, %c0_i32_0 : i32, i32
  }
  func.func @transform_5(%arg0: i32) -> (i32, i32) {
    %c0_i32 = arith.constant 0 : i32
    %c0_i32_0 = arith.constant 0 : i32
    %c0_i32_1 = arith.constant 0 : i32
    return %c0_i32, %c0_i32_0 : i32, i32
  }
  func.func @transform_6(%arg0: i32) -> (i32, i32) {
    %c0_i32 = arith.constant 0 : i32
    %c0_i32_0 = arith.constant 0 : i32
    %c0_i32_1 = arith.constant 0 : i32
    return %c0_i32, %c0_i32_0 : i32, i32
  }
  func.func @transform_7(%arg0: i32) -> (i32, i32, i32) {
    %c0_i32 = arith.constant 0 : i32
    %c0_i32_0 = arith.constant 0 : i32
    %c0_i32_1 = arith.constant 0 : i32
    return %arg0, %c0_i32, %c0_i32_0 : i32, i32, i32
  }
}

</mosaic_0001>

<bundles_post_ra>
// kernel: tpu_custom_call.1
= control target key start
LH: loop header
LB: loop body
LE: loop exit
PB: predicated region body
PF: predicated region fallthrough
CT: control target
= control target key end

     0   :  { %12 = vsyncpa [#allocation3], 0  ;;  %s1923_s0 = inlined_call_operand.vmem [shape: f32[2,4,256], index: 0, kind: input, shape index: {}]   ;;  %s1924_s1 = inlined_call_operand.hbm [shape: bf16[256,256], index: 1, kind: input, shape index: {}]   ;;  %s1925_s2 = inlined_call_operand.hbm [shape: bf16[64,576], index: 2, kind: input, shape index: {}]   ;;  %s1926_s3 = inlined_call_operand.vmem [shape: bf16[8,36], index: 3, kind: input, shape index: {}]   ;;  %s1927_s4 = inlined_call_operand.vmem [shape: f32[8,1], index: 4, kind: input, shape index: {}]   ;;  %s1928_s5 = inlined_call_operand.vmem [shape: bf16[8,72], index: 5, kind: input, shape index: {}]   ;;  %s1929_s6 = inlined_call_operand.vmem [shape: f32[8,1], index: 6, kind: input, shape index: {}]   ;;  %s1930_s7 = inlined_call_operand.hbm [shape: f32[2,8,64], index: 7, kind: output, shape index: {}]  }
   0x1   :  { %13 = vsyncpa [#allocation6], 0 }
   0x2   :  { %14 = vsyncpa [#allocation4], 0 }
   0x3   :  { %16 = vsyncpa [#allocation4 + $0x1], 0  ;;  %s1674_s24 = smov 0   ;;  %s1676_s25 = smov 0  }
   0x4   :  { %s1678_s26 = smov 0   ;;  %s1680_s27 = smov 0  }
   0x5 LB: > { %s1695_s28 = sadd.s32 4294967295, %s1621_s27   ;;  %s1195_s29 = sadd.s32 4294967294, %s1621_s27   ;;  %s1621_s27 = sphi %s1680_s27, %s1944_s27   ;;  %s1617_s26 = sphi %s1678_s26, %s1943_s26   ;;  %s1613_s25 = sphi %s1676_s25, %s1942_s25   ;;  %s1609_s24 = sphi %s1674_s24, %s1941_s24  }
   0x6   : > { %s1699_s30 = sadd.s32 1, %s1621_s27   ;;  %s181_s8 = sadd.s32 1, %s1617_s26 }
   0x7   : > { %s178_s9 = ssub.s32 %s1621_s27, %s1699_s30  ;;  %p191_p0 = scmp.ne.s32.totalorder %s1617_s26, %s1613_s25 }
   0x8   : > { %p179_p1 = scmp.eq.s32.totalorder %s178_s9, 0  ;;  %p192_p2 = scmp.eq.s32.totalorder %s1695_s28, 1 }
   0x9   : > { %p197_p3 = scmp.ne.s32.totalorder %s1613_s25, %s1609_s24  ;;  %p198_p4 = scmp.eq.s32.totalorder %s1195_s29, 1 }
   0xa   : > { %s1710_s10 = scalar_select %p179_p1, %s1617_s26, %s181_s8  }
   0xb   : > { %p1712_p5 = por %p192_p2, %p191_p0  ;;  %p1716_p6 = por %p198_p4, %p197_p3 }
   0xc   : > { %p1196_p7 = scmp.ge.s32.totalorder %s1621_s27, 1  ;;  %p205_p8 = scmp.lt.s32.totalorder %s1621_s27, 3 }
   0xd   : > { %s1933_s12 = scalar_select %p1716_p6, 1, 0 }
   0xe   : > { %p1931_p9 = scmp.eq.s32.totalorder %s1695_s28, 0  ;;  %p1723_p10 = pnand %p1196_p7, %p205_p8 }
   0xf   : > { %s1623_s14 = smov [#allocation2]   ;;  %s1624_s17 = smov [#allocation5]  }
  0x10   : > { %s217_s15 = sshll.u32 %s1623_s14, 4  ;;  %p1349_p11 = pneg %p1723_p10  ;;  %s218_s15 = int_to_ptr.vmem [resolvable:$true] %s217_s15 }
  0x11   : > { %s230_s18 = sshll.u32 %s1624_s17, 4  ;;  %s1512_s19 = scalar_lea.vmem %s218_s15, 4096  ;;  %s231_s18 = int_to_ptr.vmem [resolvable:$true] %s230_s18 }
  0x12   : > { %p1731_p12 = pnand %p1931_p9, %p1349_p11  ;;  %p1513_p0 = scmp.ne.s32.totalorder %s218_s15, %s1512_s19 }
  0x13   : > { %p1520_p3 = scmp.lt.s32.totalorder %s218_s15, %s218_s15  ;;  %p1521_p4 = scmp.lt.s32.totalorder %s1512_s19, %s1512_s19 }
  0x14   : > { %p1503_p13 = pneg %p1731_p12 }
  0x15   : > { %p1522_p7 = por %p1521_p4, %p1520_p3 }
  0x16   : > { %p1515_p1 = pnand %p1513_p0, %p1503_p13 }
  0x18   : > { %p1516_p2 = pneg %p1515_p1 }
  0x1a   : > { %p1523_p8 = pnand %p1522_p7, %p1516_p2 }
  0x1c   : > { %1526 = shalt.err (!%p1523_p8)
}
  0x1d   : > { %s1625_s20 = smov 128   ;;  %s1626_s21 = smov 8  }
  0x1e   : > { %1352 = dma.hbm_to_vmem [thread:$0]  (!%p1731_p12), %s1924_s1, 4096, %s218_s15, [#allocation3], %s1625_s20, %s1625_s20, %s1626_s21  }
  0x1f   : > { %s1538_s29 = scalar_lea.vmem %s231_s18, 2560  ;;  %p1546_p9 = scmp.lt.s32.totalorder %s231_s18, %s231_s18 }
  0x20   : > { %p1539_p11 = scmp.ne.s32.totalorder %s231_s18, %s1538_s29  ;;  %p1547_p6 = scmp.lt.s32.totalorder %s1538_s29, %s1538_s29 }
  0x22   : > { %p1541_p0 = pnand %p1539_p11, %p1503_p13  ;;  %p1548_p3 = por %p1547_p6, %p1546_p9 }
  0x24   : > { %p1542_p1 = pneg %p1541_p0 }
  0x26   : > { %p1549_p2 = pnand %p1548_p3, %p1542_p1 }
  0x28   : > { %1552 = shalt.err (!%p1549_p2)
}
  0x29   : > { %s1627_s8 = smov 320   ;;  %s1628_s9 = smov 20  }
  0x2a   : > { %1355 = dma.hbm_to_vmem [thread:$0]  (!%p1731_p12), %s1925_s2, 2560, %s231_s18, [#allocation6], %s1627_s8, %s1627_s8, %s1628_s9  }
  0x2b   : > { %266 = sbr.rel (%p1723_p10) target bundleno = 1516 (0x5ec), region = 48  ;;  %p1936_p4 = scmp.eq.s32.totalorder (!%p1723_p10), %s1695_s28, 0 }
  0x30   : > { %1596 = dma.done.wait (%p1936_p4), [#allocation3], 4096   ;;  %p1937_p13 = pmov %p1936_p4 }
  0x31   : > { %p1938_p6 = pmov %p1936_p4 }
  0x32   : > { %1598 = vsyncadd (%p1937_p13), [#allocation3], 4294963200 }
  0x33   : > { %1600 = dma.done.wait (%p1938_p6), [#allocation6], 2560   ;;  %p1939_p9 = pmov %p1936_p4 }
  0x34   : > { %v1424_v0 = vld [vmem:[#allocation2 + $0x74] ss:$8 sps:$4 sm:$0xff]   ;;  %v1426_v1 = vld [vmem:[#allocation2 + $0x70] ss:$8 sps:$4 sm:$0xff]   ;;  %v1427_v2 = vld [vmem:[#allocation2 + $0x64] ss:$8 sps:$4 sm:$0xff]  }
  0x35   : > { %1602 = vsyncadd (%p1939_p9), [#allocation6], 4294964736  ;;  %534 = vmatprep.subr.bf16.mxu0 %v1424_v0  ;;  %v1429_v3 = vld [vmem:[#allocation2 + $0x60] ss:$8 sps:$4 sm:$0xff]   ;;  %v1430_v4 = vld [vmem:[#allocation2 + $0x54] ss:$8 sps:$4 sm:$0xff]  }
  0x36   : > { %535 = vmatpush1.bf16.msra.mxu0 %v1426_v1  ;;  %v1432_v5 = vld [vmem:[#allocation2 + $0x50] ss:$8 sps:$4 sm:$0xff]   ;;  %p302_p10 = scmp.lt.s32.totalorder %s1695_s28, 1  ;;  %v1433_v6 = vld [vmem:[#allocation2 + $0x44] ss:$8 sps:$4 sm:$0xff]   ;;  %v1629_v45 = vmov 0  }
  0x37   : > { %536 = vmatprep.subr.bf16.mxu0 %v1427_v2  ;;  %v1435_v7 = vld [vmem:[#allocation2 + $0x40] ss:$8 sps:$4 sm:$0xff]   ;;  %v1436_v8 = vld [vmem:[#allocation2 + $0x34] ss:$8 sps:$4 sm:$0xff]   ;;  %v1438_v9 = vld [vmem:[#allocation2 + $0x30] ss:$8 sps:$4 sm:$0xff]   ;;  %727 = vmatprep.mubr.bf16.mxu1 %v1629_v45 }
  0x38   : > { %s303_s13 = scalar_select %p302_p10, %s1695_s28, 1  ;;  %v1439_v10 = vld [vmem:[#allocation2 + $0x24] ss:$8 sps:$4 sm:$0xff]   ;;  %v1441_v11 = vld [vmem:[#allocation2 + $0x20] ss:$8 sps:$4 sm:$0xff]   ;;  %1422 = vset.pattern.permute.xlu1 %v1629_v45  ;;  %1423 = vset.pattern.permute.xlu0 %v1629_v45  ;;  %v1631_v58 = vmov 0.0  }
  0x39   : > { %v1442_v12 = vld [vmem:[#allocation2 + $0x14] ss:$8 sps:$4 sm:$0xff]   ;;  %v1444_v13 = vld [vmem:[#allocation2 + $0x10] ss:$8 sps:$4 sm:$0xff]   ;;  %v1445_v15 = vld [vmem:[#allocation2 + $0x4] ss:$8 sps:$4 sm:$0xff]  }
  0x3a   : > { %537 = vmatpush1.bf16.msra.mxu0 %v1429_v3  ;;  %s1270_s15 = sshll.u32 %s303_s13, 3  ;;  %v1447_v18 = vld [vmem:[#allocation2] ss:$8 sps:$4 sm:$0xff]   ;;  %v1448_v19 = vld [vmem:[#allocation2 + $0xf4] ss:$8 sps:$4 sm:$0xff]   ;;  %s1630_s20 = smov 64  }
  0x3b   : > { %538 = vmatprep.subr.bf16.mxu0 %v1430_v4  ;;  %s306_s19 = scalar_lea.vmem %s1923_s0, %s1270_s15  ;;  %v1450_v20 = vld [vmem:[#allocation2 + $0xf0] ss:$8 sps:$4 sm:$0xff]   ;;  %v1451_v21 = vld [vmem:[#allocation2 + $0xe4] ss:$8 sps:$4 sm:$0xff]   ;;  %v1453_v22 = vld [vmem:[#allocation2 + $0xe0] ss:$8 sps:$4 sm:$0xff]  }
  0x3c   : > { %v368_v14 = vld [vmem:[%s306_s19] sm:$0xff]  ;;  %v1454_v23 = vld [vmem:[#allocation2 + $0xd4] ss:$8 sps:$4 sm:$0xff]   ;;  %v1456_v24 = vld [vmem:[#allocation2 + $0xd0] ss:$8 sps:$4 sm:$0xff]   ;;  %vm691_vm0 = vcmask 523264  }
  0x3d   : > { %v370_v16 = vcombine.high %v368_v14, %v368_v14  ;;  %v1457_v25 = vld [vmem:[#allocation2 + $0xc4] ss:$8 sps:$4 sm:$0xff]   ;;  %v1459_v26 = vld [vmem:[#allocation2 + $0xc0] ss:$8 sps:$4 sm:$0xff]   ;;  %v1460_v27 = vld [vmem:[#allocation2 + $0xb4] ss:$8 sps:$4 sm:$0xff]   ;;  %v372_v35 = vpack.c.bf16 %v368_v14, %v368_v14 }
  0x3e   : > { %539 = vmatpush1.bf16.msra.mxu0 %v1432_v5  ;;  %v1462_v28 = vld [vmem:[#allocation2 + $0xb0] ss:$8 sps:$4 sm:$0xff]   ;;  %v1463_v29 = vld [vmem:[#allocation2 + $0xa4] ss:$8 sps:$4 sm:$0xff]   ;;  %v1465_v30 = vld [vmem:[#allocation2 + $0xa0] ss:$8 sps:$4 sm:$0xff]  }
  0x3f   : > { %540 = vmatprep.subr.bf16.mxu0 %v1433_v6  ;;  %v373_v17 = vpack.c.bf16 %v370_v16, %v370_v16  ;;  %v1466_v31 = vld [vmem:[#allocation2 + $0x94] ss:$8 sps:$4 sm:$0xff]   ;;  %v1468_v32 = vld [vmem:[#allocation2 + $0x90] ss:$8 sps:$4 sm:$0xff]   ;;  %v1469_v33 = vld [vmem:[#allocation2 + $0x84] ss:$8 sps:$4 sm:$0xff]  }
  0x40   : > { %v1471_v34 = vld [vmem:[#allocation2 + $0x80] ss:$8 sps:$4 sm:$0xff]   ;;  %v1768_v36 = vld [vmem:[#allocation5 + $0x7c] ss:$20 sps:$4 sm:$0xff]   ;;  %v1770_v37 = vld [vmem:[#allocation5 + $0x78] ss:$20 sps:$4 sm:$0xff]  }
  0x41   : > { %566 = vmatprep.mubr.bf16.mxu0 %v373_v17  ;;  %v1772_v38 = vld [vmem:[#allocation5 + $0x54] ss:$20 sps:$4 sm:$0xff]   ;;  %703 = vmatprep.subr.bf16.mxu1 %v1768_v36  ;;  %v1776_v39 = vld [vmem:[#allocation5 + $0x50] ss:$20 sps:$4 sm:$0xff]   ;;  %v1779_v40 = vld [vmem:[#allocation5 + $0x2c] ss:$20 sps:$4 sm:$0xff]  }
  0x42   : > { %541 = vmatpush1.bf16.msra.mxu0 %v1435_v7  ;;  %704 = vmatpush1.bf16.msra.mxu1 %v1770_v37  ;;  %v1783_v41 = vld [vmem:[#allocation5 + $0x28] ss:$20 sps:$4 sm:$0xff]   ;;  %v1786_v42 = vld [vmem:[#allocation5 + $0x4] ss:$20 sps:$4 sm:$0xff]   ;;  %v1788_v43 = vld [vmem:[#allocation5] ss:$20 sps:$4 sm:$0xff]  }
  0x43   : > { %542 = vmatprep.subr.bf16.mxu0 %v1436_v8  ;;  %705 = vmatprep.subr.bf16.mxu1 %v1772_v38  ;;  %v1487_v44 = vld [vmem:[#allocation5 + $0x84] ss:$20 sps:$4 sm:$0xff]   ;;  %v1485_v46 = vld [vmem:[#allocation5 + $0x80] ss:$20 sps:$4 sm:$0xff]   ;;  %v1490_v48 = vld [vmem:[#allocation5 + $0x5c] ss:$20 sps:$4 sm:$0xff]  }
  0x44   : > { %v1488_v51 = vld [vmem:[#allocation5 + $0x58] ss:$20 sps:$4 sm:$0xff]   ;;  %v1493_v53 = vld [vmem:[#allocation5 + $0x34] ss:$20 sps:$4 sm:$0xff]   ;;  %v1491_v55 = vld [vmem:[#allocation5 + $0x30] ss:$20 sps:$4 sm:$0xff]  }
  0x45   : > { %v1496_v56 = vld [vmem:[#allocation5 + $0xc] ss:$20 sps:$4 sm:$0xff]   ;;  %v1494_v57 = vld [vmem:[#allocation5 + $0x8] ss:$20 sps:$4 sm:$0xff]   ;;  %vm1632_vm1 = vmmov 0   ;;  %vm854_vm2 = vcmask 1041408  }
  0x46   : > { %543 = vmatpush1.bf16.msra.mxu0 %v1438_v9  ;;  %706 = vmatpush1.bf16.msra.mxu1 %v1776_v39  ;;  %v1800_v2 = vld [vmem:[#allocation5 + $0x88] ss:$20 sps:$4 sm:$0xff]   ;;  %v1805_v3 = vld [vmem:[#allocation5 + $0x60] ss:$20 sps:$4 sm:$0xff]   ;;  %v1811_v4 = vld [vmem:[#allocation5 + $0x38] ss:$20 sps:$4 sm:$0xff]  }
  0x47   : > { %544 = vmatprep.subr.bf16.mxu0 %v1439_v10  ;;  %707 = vmatprep.subr.bf16.mxu1 %v1779_v40  ;;  %v1815_v5 = vld [vmem:[#allocation5 + $0x10] ss:$20 sps:$4 sm:$0xff]   ;;  %vm837_vm3 = vcmask 1043456   ;;  %vm850_vm4 = vcmask 293888   ;;  %vm1051_vm5 = vcmask 588800   ;;  %s299_s13 = sand.u32 1, %s1613_s25  }
  0x48   : > { %s1203_s15 = sshll.u32 %s299_s13, 3  ;;  %s1267_s16 = sshll.u32 %s1695_s28, 7 }
  0x49   : > { %s301_s18 = scalar_lea.vmem [#allocation7], %s1203_s15  ;;  %s1881_s22 = scalar_lea.hbm %s1930_s7, %s1267_s16 }
  0x4a   : > { %545 = vmatpush1.bf16.msra.mxu0 %v1441_v11  ;;  %708 = vmatpush1.bf16.msra.mxu1 %v1783_v41  ;;  %s1114_s19 = sshll.u32 %s301_s18, 4  ;;  %s1101_s28 = scalar_lea.sflag [#allocation4], %s299_s13  ;;  %s1883_s19 = int_to_ptr.vmem [resolvable:$true] %s1114_s19 }
  0x4b   : > { %546 = vmatprep.subr.bf16.mxu0 %v1442_v12  ;;  %709 = vmatprep.subr.bf16.mxu1 %v1786_v42  ;;  %s1553_s23 = scalar_lea.vmem %s1883_s19, 128  ;;  %s1633_s29 = smov [#allocation7]  }
  0x4c   : > { %p1554_p12 = scmp.ne.s32.totalorder %s1883_s19, %s1553_s23  ;;  %s1557_s8 = sshll.u32 %s1633_s29, 4  ;;  %s1558_s8 = int_to_ptr.vmem [resolvable:$false] %s1557_s8 }
  0x4d   : > { %s1559_s9 = scalar_lea.vmem %s1558_s8, 256  ;;  %p1560_p11 = scmp.lt.s32.totalorder %s1883_s19, %s1558_s8 }
  0x4e   : > { %547 = vmatpush1.bf16.msra.mxu0 %v1444_v13  ;;  %710 = vmatpush1.bf16.msra.mxu1 %v1788_v43  ;;  %p1555_p7 = pnand %p1554_p12, %p1712_p5  ;;  %p1561_p0 = scmp.lt.s32.totalorder %s1559_s9, %s1553_s23 }
  0x4f   : > { %548 = vmatprep.subr.bf16.mxu0 %v1445_v15  ;;  %744 = vmatprep.subr.bf16.mxu1 %v1487_v44 }
  0x50   : > { %p1556_p8 = pneg %p1555_p7  ;;  %p1562_p1 = por %p1561_p0, %p1560_p11 }
  0x52   : > { %549 = vmatpush1.bf16.msra.mxu0 %v1447_v18  ;;  %p1563_p3 = pnand %p1562_p1, %p1556_p8 }
  0x53   : > { %550 = vmatprep.subr.bf16.mxu0 %v1448_v19 }
  0x56   : > { %551 = vmatpush2.bf16.msra.mxu0 %v1450_v20  ;;  %v366_v20 = vld [vmem:[%s1927_s4] sm:$0xff] }
  0x57   : > { %552 = vmatprep.subr.bf16.mxu0 %v1451_v21 }
  0x5a   : > { %553 = vmatpush2.bf16.msra.mxu0 %v1453_v22 }
  0x5b   : > { %554 = vmatprep.subr.bf16.mxu0 %v1454_v23 }
  0x5e   : > { %555 = vmatpush2.bf16.msra.mxu0 %v1456_v24 }
  0x5f   : > { %556 = vmatprep.subr.bf16.mxu0 %v1457_v25 }
  0x62   : > { %557 = vmatpush2.bf16.msra.mxu0 %v1459_v26 }
  0x63   : > { %558 = vmatprep.subr.bf16.mxu0 %v1460_v27 }
  0x66   : > { %559 = vmatpush2.bf16.msra.mxu0 %v1462_v28 }
  0x67   : > { %560 = vmatprep.subr.bf16.mxu0 %v1463_v29 }
  0x6a   : > { %561 = vmatpush2.bf16.msra.mxu0 %v1465_v30 }
  0x6b   : > { %562 = vmatprep.subr.bf16.mxu0 %v1466_v31 }
  0x6e   : > { %563 = vmatpush2.bf16.msra.mxu0 %v1468_v32 }
  0x6f   : > { %564 = vmatprep.subr.bf16.mxu0 %v1469_v33 }
  0x72   : > { %565 = vmatpush2.bf16.msra.mxu0 %v1471_v34 }
  0x73   : > { %952 = vmatprep.subr.bf16.mxu0 %v1487_v44 }
  0x75   : > { %567 = vmatmul.mubr.bf16.vlgmr.msra.gmra.mxu0 %v372_v35 }
  0x76   : > { %953 = vmatpush1.bf16.msra.mxu0 %v1485_v46  ;;  %976 = vmatprep.mubr.bf16.mxu0 %v1629_v45 }
  0x77   : > { %954 = vmatprep.subr.bf16.mxu0 %v1490_v48 }
  0x7a   : > { %955 = vmatpush1.bf16.msra.mxu0 %v1488_v51 }
  0x7b   : > { %956 = vmatprep.subr.bf16.mxu0 %v1493_v53 }
  0x7e   : > { %957 = vmatpush1.bf16.msra.mxu0 %v1491_v55 }
  0x7f   : > { %958 = vmatprep.subr.bf16.mxu0 %v1496_v56 }
  0x82   : > { %959 = vmatpush1.bf16.msra.mxu0 %v1494_v57 }
  0x83   : > { %1325 = vmatprep.subr.bf16.mxu0 %v1631_v58 }
 0x135   : > { %v568_v47 = vpop.f32.mrf.mxu0 }
 0x137   : > { %v570_v49 = vpop.f32.mrf.mxu0 }
 0x138   : > { %v1407_v50 = vpack.i.bf16 %v570_v49, %v568_v47 }
 0x139   : > { %v572_v52 = vpop.f32.mrf.mxu0 }
 0x13a   : > { %1408 = vrot.lane.b32.xlu0 %v1407_v50, %s1630_s20 }
 0x13b   : > { %v573_v54 = vpop.f32.mrf.mxu0 }
 0x1ac   : > { %v1409_v59 = vpop.permute.xlu0 %1408 }
 0x1ad   : > { %v1411_v60 = vunpack.i.h.bf16 %v1409_v59  ;;  %v1410_v61 = vunpack.i.l.bf16 %v1409_v59 }
 0x1af   : > { %v584_v62 = vmax.f32 %v570_v49, %v1411_v60  ;;  %v579_v63 = vmax.f32 %v568_v47, %v1410_v61 }
 0x1b1   : > { %v585_v0 = vmax.f32 %v579_v63, %v584_v62 }
 0x1b3   : > { %v586_v1 = vpack.c.bf16 %v585_v0, %v585_v0 }
 0x1b5   : > { %1258 = vmatmul.mubr.msk.bf16.vlgmr.msra.gmra.mxu1 %vm691_vm0, %v586_v1 }
 0x1b6   : > { %745 = vmatpush1.bf16.msra.mxu1 %v1485_v46  ;;  %768 = vmatprep.mubr.bf16.mxu1 %v1629_v45 }
 0x1b7   : > { %746 = vmatprep.subr.bf16.mxu1 %v1490_v48  ;;  %v364_v48 = vld [vmem:[%s1926_s3] sm:$0xf] }
 0x1ba   : > { %747 = vmatpush1.bf16.msra.mxu1 %v1488_v51 }
 0x1bb   : > { %748 = vmatprep.subr.bf16.mxu1 %v1493_v53 }
 0x1be   : > { %749 = vmatpush1.bf16.msra.mxu1 %v1491_v55 }
 0x1bf   : > { %750 = vmatprep.subr.bf16.mxu1 %v1496_v56  ;;  %v367_v56 = vld [vmem:[%s1929_s6] sm:$0xff] }
 0x1c2   : > { %751 = vmatpush1.bf16.msra.mxu1 %v1494_v57 }
 0x1c3   : > { %1291 = vmatprep.subr.bf16.mxu1 %v1631_v58 }
 0x1c5   : > { %1259 = vmatmul.mubr.msk.bf16.vlgmr.msra.gmra.mxu1 %vm691_vm0, %v586_v1 }
 0x1c6   : > { %1292 = vmatpush3.bf16.msra.mxu1 %v1800_v2  ;;  %1299 = vmatprep.mubr.msk.bf16.mxu1 %vm1632_vm1, %v1631_v58 }
 0x1c7   : > { %1293 = vmatprep.subr.bf16.mxu1 %v1631_v58 }
 0x1ca   : > { %1294 = vmatpush3.bf16.msra.mxu1 %v1805_v3 }
 0x1cb   : > { %1295 = vmatprep.subr.bf16.mxu1 %v1631_v58 }
 0x1ce   : > { %1296 = vmatpush3.bf16.msra.mxu1 %v1811_v4 }
 0x1cf   : > { %1297 = vmatprep.subr.bf16.mxu1 %v1631_v58 }
 0x1d2   : > { %1298 = vmatpush3.bf16.msra.mxu1 %v1815_v5 }
 0x1d3   : > { %1303 = vmatprep.subr.bf16.mxu1 %v1631_v58 }
 0x1d5   : > { %1300 = vmatmul.mubr.msk.bf16.vlgmr.msra.gmra.mxu1 %vm691_vm0, %v586_v1 }
 0x1d6   : > { %1309 = vmatprep.mubr.msk.bf16.mxu1 %vm1632_vm1, %v1631_v58 }
 0x275   : > { %v729_v6 = vpop.f32.mrf.mxu1 }
 0x276   : > { %v818_v8 = vrot.slane %v729_v6, 4 }
 0x277   : > { %v731_v7 = vpop.f32.mrf.mxu1 }
 0x278   : > { %v823_v9 = vrot.slane %v731_v7, 4 }
 0x279   : > { %v733_v10 = vpop.f32.mrf.mxu1 }
 0x27a   : > { %v1417_v11 = vpack.i.bf16 %v823_v9, %v818_v8  ;;  %v365_v8 = vld [vmem:[%s1928_s5] sm:$0xf] }
 0x27b   : > { %v734_v12 = vpop.f32.mrf.mxu1 }
 0x27c   : > { %1418 = vrot.lane.b32.xlu1 %v1417_v11, %s1630_s20 }
 0x280   : > { %847 = vperm.xlu1 %1422, %v366_v20  }
 0x285   : > { %v770_v13 = vpop.f32.mrf.mxu1 }
 0x286   : > { %v828_v15 = vrot.slane %v770_v13, 4 }
 0x287   : > { %v772_v14 = vpop.f32.mrf.mxu1 }
 0x288   : > { %v833_v16 = vrot.slane %v772_v14, 4 }
 0x289   : > { %v774_v17 = vpop.f32.mrf.mxu1 }
 0x28a   : > { %v1412_v18 = vpack.i.bf16 %v833_v16, %v828_v15 }
 0x28b   : > { %v775_v19 = vpop.f32.mrf.mxu1 }
 0x28c   : > { %1413 = vrot.lane.b32.xlu0 %v1412_v18, %s1630_s20 }
 0x295   : > { %v811_v21 = vpop.f32.mrf.mxu1 }
 0x296   : > { %v844_v22 = vpack.c.bf16 %v811_v21, %v811_v21 }
 0x297   : > { %v1301_v23 = vpop.f32.mrf.mxu1 }
 0x298   : > { %v856_v24 = vsel %vm854_vm2, %v844_v22, 0 }
 0x299   : > { %v814_v25 = vpop.f32.mrf.mxu1  ;;  %1304 = vmatpush3.bf16.msra.mxu1 %v856_v24 }
 0x29a   : > { %1305 = vmatprep.subr.bf16.mxu1 %v1631_v58 }
 0x29b   : > { %v1302_v26 = vpop.f32.mrf.mxu1 }
 0x2ee   : > { %v1419_v27 = vpop.permute.xlu1 %1418 }
 0x2ef   : > { %v1421_v29 = vunpack.i.h.bf16 %v1419_v27  ;;  %v1420_v30 = vunpack.i.l.bf16 %v1419_v27 }
 0x2f1   : > { %v839_v44 = vsel %vm837_vm3, %v731_v7, %v1421_v29  ;;  %v838_v46 = vsel %vm837_vm3, %v729_v6, %v1420_v30 }
 0x2f2   : > { %v842_v47 = vpack.c.bf16 %v839_v44, %v838_v46 }
 0x2fe   : > { %v1414_v28 = vpop.permute.xlu0 %1413 }
 0x2ff   : > { %v1416_v31 = vunpack.i.h.bf16 %v1414_v28  ;;  %v1415_v32 = vunpack.i.l.bf16 %v1414_v28 }
 0x301   : > { %v841_v33 = vsel %vm837_vm3, %v772_v14, %v1416_v31  ;;  %v840_v34 = vsel %vm837_vm3, %v770_v13, %v1415_v32 }
 0x302   : > { %v843_v35 = vpack.c.bf16 %v841_v33, %v840_v34 }
 0x304   : > { %1306 = vmatpush3.bf16.msra.mxu1 %v843_v35 }
 0x305   : > { %1307 = vmatprep.subr.bf16.mxu1 %v1631_v58 }
 0x308   : > { %1308 = vmatpush3.bf16.msra.mxu1 %v842_v47 }
 0x309   : > { %911 = vmatprep.subr.bf16.mxu1 %v1768_v36  ;;  %v848_v36 = vpop.permute.xlu1 %847 }
 0x30b   : > { %1310 = vmatmul.mubr.msk.bf16.vlgmr.msra.gmra.mxu1 %vm850_vm4, %v364_v48 }
 0x30c   : > { %912 = vmatpush1.bf16.msra.mxu1 %v1770_v37  ;;  %935 = vmatprep.mubr.bf16.mxu1 %v1629_v45 }
 0x30d   : > { %913 = vmatprep.subr.bf16.mxu1 %v1772_v38 }
 0x310   : > { %914 = vmatpush1.bf16.msra.mxu1 %v1776_v39 }
 0x311   : > { %915 = vmatprep.subr.bf16.mxu1 %v1779_v40 }
 0x314   : > { %916 = vmatpush1.bf16.msra.mxu1 %v1783_v41 }
 0x315   : > { %917 = vmatprep.subr.bf16.mxu1 %v1786_v42 }
 0x318   : > { %918 = vmatpush1.bf16.msra.mxu1 %v1788_v43 }
 0x319   : > { %1313 = vmatprep.subr.bf16.mxu1 %v1631_v58 }
 0x3cb   : > { %v892_v49 = vpop.f32.mrf.mxu1 }
 0x3cc   : > { %v893_v50 = vadd.f32 %v892_v49, %v848_v36 }
 0x3cd   : > { %v1311_v37 = vpop.f32.mrf.mxu1 }
 0x3ce   : > { %v898_v51 = vmax.f32 %v893_v50, 0.0 }
 0x3cf   : > { %v895_v45 = vpop.f32.mrf.mxu1 }
 0x3d0   : > { %v899_v52 = vpack.c.bf16 %v898_v51, %v898_v51 }
 0x3d1   : > { %v1312_v38 = vpop.f32.mrf.mxu1 }
 0x3d2   : > { %1262 = vmatmul.mubr.msk.bf16.vlgmr.msra.gmra.mxu1 %vm691_vm0, %v899_v52  ;;  %1263 = vmatmul.mubr.msk.bf16.vlgmr.msra.gmra.mxu0 %vm691_vm0, %v899_v52 }
 0x3d3   : > { %1314 = vmatpush3.bf16.msra.mxu1 %v1800_v2  ;;  %1321 = vmatprep.mubr.msk.bf16.mxu1 %vm1632_vm1, %v1631_v58 }
 0x3d4   : > { %1315 = vmatprep.subr.bf16.mxu1 %v1631_v58  ;;  %1335 = vmatprep.mubr.msk.bf16.mxu0 %vm1632_vm1, %v1631_v58 }
 0x3d7   : > { %1316 = vmatpush3.bf16.msra.mxu1 %v1805_v3 }
 0x3d8   : > { %1317 = vmatprep.subr.bf16.mxu1 %v1631_v58 }
 0x3db   : > { %1318 = vmatpush3.bf16.msra.mxu1 %v1811_v4 }
 0x3dc   : > { %1319 = vmatprep.subr.bf16.mxu1 %v1631_v58 }
 0x3df   : > { %1320 = vmatpush3.bf16.msra.mxu1 %v1815_v5 }
 0x3e2   : > { %1322 = vmatmul.mubr.msk.bf16.vlgmr.msra.gmra.mxu1 %vm691_vm0, %v899_v52 }
 0x492   : > { %v937_v39 = vpop.f32.mrf.mxu1  ;;  %v978_v40 = vpop.f32.mrf.mxu0 }
 0x493   : > { %1034 = vrot.lane.b32.xlu1 %v978_v40, %s1630_s20 }
 0x494   : > { %v939_v41 = vpop.f32.mrf.mxu1  ;;  %v980_v42 = vpop.f32.mrf.mxu0 }
 0x495   : > { %1038 = vrot.lane.b32.xlu0 %v980_v42, %s1630_s20 }
 0x496   : > { %v941_v43 = vpop.f32.mrf.mxu1  ;;  %v982_v53 = vpop.f32.mrf.mxu0 }
 0x497   : > { %1026 = vrot.lane.b32.xlu1 %v937_v39, %s1630_s20 }
 0x498   : > { %v942_v54 = vpop.f32.mrf.mxu1  ;;  %v983_v55 = vpop.f32.mrf.mxu0 }
 0x499   : > { %1030 = vrot.lane.b32.xlu0 %v939_v41, %s1630_s20 }
 0x49d   : > { %1048 = vperm.xlu0 %1423, %v367_v56  }
 0x4a2   : > { %v1019_v57 = vpop.f32.mrf.mxu1 }
 0x4a3   : > { %v1045_v59 = vpack.c.bf16 %v1019_v57, %v1019_v57 }
 0x4a4   : > { %v1323_v60 = vpop.f32.mrf.mxu1 }
 0x4a5   : > { %v1056_v61 = vsel %vm837_vm3, %v1045_v59, 0 }
 0x4a6   : > { %v1022_v62 = vpop.f32.mrf.mxu1  ;;  %1326 = vmatpush3.bf16.msra.mxu0 %v1056_v61 }
 0x4a7   : > { %1327 = vmatprep.subr.bf16.mxu0 %v1631_v58 }
 0x4a8   : > { %v1324_v63 = vpop.f32.mrf.mxu1 }
 0x505   : > { %v1035_v2 = vpop.permute.xlu1 %1034 }
 0x506   : > { %v1043_v3 = vpack.c.bf16 %v1035_v2, %v978_v40 }
 0x507   : > { %v1039_v0 = vpop.permute.xlu0 %1038 }
 0x508   : > { %v1044_v1 = vpack.c.bf16 %v1039_v0, %v980_v42 }
 0x509   : > { %v1027_v6 = vpop.permute.xlu1 %1026 }
 0x50a   : > { %1328 = vmatpush3.bf16.msra.mxu0 %v1044_v1  ;;  %v1041_v7 = vpack.c.bf16 %v1027_v6, %v937_v39 }
 0x50b   : > { %1329 = vmatprep.subr.bf16.mxu0 %v1631_v58  ;;  %v1031_v4 = vpop.permute.xlu0 %1030 }
 0x50c   : > { %v1042_v5 = vpack.c.bf16 %v1031_v4, %v939_v41 }
 0x50e   : > { %1330 = vmatpush3.bf16.msra.mxu0 %v1043_v3 }
 0x50f   : > { %1331 = vmatprep.subr.bf16.mxu0 %v1631_v58 }
 0x512   : > { %1332 = vmatpush3.bf16.msra.mxu0 %v1042_v5 }
 0x513   : > { %1333 = vmatprep.subr.bf16.mxu0 %v1631_v58 }
 0x516   : > { %1334 = vmatpush3.bf16.msra.mxu0 %v1041_v7 }
 0x518   : > { %v1049_v9 = vpop.permute.xlu0 %1048 }
 0x519   : > { %1336 = vmatmul.mubr.msk.bf16.vlgmr.msra.gmra.mxu0 %vm1051_vm5, %v365_v8 }
 0x5d9   : > { %v1092_v10 = vpop.f32.mrf.mxu0 }
 0x5da   : > { %v1093_v11 = vadd.f32 %v1092_v10, %v1049_v9 }
 0x5db   : > { %v1337_v12 = vpop.f32.mrf.mxu0 }
 0x5dc   : > { %v1098_v13 = vmax.f32 %v1093_v11, 0.0 }
 0x5dd   : > { %v1095_v58 = vpop.f32.mrf.mxu0 }
 0x5de   : > { %1099 = vst.msk [vmem:[%s301_s18] sm:$0xff] %vm691_vm0, %v1098_v13 }
 0x5df   : > { %v1338_v14 = vpop.f32.mrf.mxu0 }
 0x5e0   : > { %1566 = shalt.err (!%p1563_p3)
}
 0x5e1   : > { %s1567_s14 = scalar_lea.hbm %s1881_s22, 128  ;;  %s1571_s15 = scalar_lea.hbm %s1930_s7, 256 }
 0x5e2   : > { %p1568_p2 = scmp.ne.s32.totalorder %s1881_s22, %s1567_s14  ;;  %p1572_p6 = scmp.lt.s32.totalorder %s1881_s22, %s1930_s7 }
 0x5e3   : > { %p1573_p9 = scmp.lt.s32.totalorder %s1571_s15, %s1567_s14 }
 0x5e4   : > { %p1569_p4 = pnand %p1568_p2, %p1712_p5 }
 0x5e5   : > { %p1574_p10 = por %p1573_p9, %p1572_p6 }
 0x5e6   : > { %p1570_p13 = pneg %p1569_p4 }
 0x5e8   : > { %p1575_p12 = pnand %p1574_p10, %p1570_p13 }
 0x5ea   : > { %1578 = shalt.err (!%p1575_p12)
}
 0x5eb   : > { %1347 = dma.vmem_to_hbm [thread:$0]  (%p1712_p5), %s1883_s19, 128, %s1881_s22, %s1101_s28  }
 0x5ec PF: > { %p1364_p7 = scmp.ge.s32.totalorder %s1621_s27, 2  ;;  %s1126_s20 = sand.u32 1, %s1609_s24  }
 0x5ed   : > { %p1940_p8 = scmp.ne.s32.totalorder %s1933_s12, 0  ;;  %s1127_s21 = scalar_lea.sflag [#allocation4], %s1126_s20 }
 0x5ef   : > { %p1357_p11 = pnand %p1364_p7, %p1940_p8 }
 0x5f1   : > { %p1358_p0 = pneg %p1357_p11 }
 0x5f3   : > { %1604 = dma.done.wait (%p1358_p0), %s1127_s21, 128  }
 0x5f4   : > { %1606 = vsyncadd (%p1358_p0), %s1127_s21, 4294967168  ;;  %p19_p1 = scmp.ge.s32.totalorder %s1699_s30, 4   ;;  %s1941_s24 = smov %s1613_s25 }
 0x5f5   : > { %s1942_s25 = smov %s1617_s26  ;;  %s1943_s26 = smov %s1710_s10 }
 0x5f6   : > { %s1944_s27 = smov %s1699_s30  ;;  %21 = sbr.rel (!%p19_p1) target bundleno = 5 (0x5), region = 92 }
 0x5fb   :  { %1132 = vsyncpa [#allocation3], 1 }
 0x5fc   :  { %1134 = vsyncpa [#allocation3 + $0x1], 1 }
 0x5fd   :  { %1135 = vsyncpa [#allocation6], 1 }
 0x5fe   :  { %1136 = vsyncpa [#allocation4], 1 }
 0x5ff   :  { %1138 = vsyncpa [#allocation4 + $0x1], 1 }

</bundles_post_ra>
